<compile_context>
chip_gen: v7x
topology: tpu7x:2x2x1
jax: 0.10.0
libtpu: 0.0.40
codegen_flags: <defaults>
</compile_context>

<pallas_src>
import functools

import jax
import jax.numpy as jnp
from jax.experimental import pallas as pl
from jax.experimental.pallas import tpu as pltpu


# ----------------------------------------------------------------------------
# Lane-dense (multiple-of-128) matmul widths
# ----------------------------------------------------------------------------
KPAD = 128       # stem contraction width in VMEM (9*Cin = 36 real, zero-padded)
CSTEM = 128      # stem channels (32 real, zero-padded)
CFEAT = 128      # backbone feature width   (stand-in for 1280)
DCLS = 256       # classifier[1] out        (stand-in for 8000)
DFC1 = 512       # fc1 out                  (stand-in for 16000)
TFC1 = 256       # fc1 tile width on the head grid axis
NOUT = 5         # fc2 out (real)
NOUT_PAD = 128   # lane-dense fc2 output (sliced back to 5 in the wrapper)

# Set True on v6e/v7x to run the SiLU sigmoid through the bf16 EUP path;
# keep False on v5e (no bf16 VPU/EUP, casts would only add cost).
SILU_SIGMOID_BF16 = False


def _round_up(x, m):
    return (x + m - 1) // m * m


def _silu(y):
    if SILU_SIGMOID_BF16:
        return y * jax.nn.sigmoid(y.astype(jnp.bfloat16)).astype(jnp.float32)
    return y * jax.nn.sigmoid(y)


def _dropout(x, p, bits):
    u = bits if bits.dtype == jnp.uint32 else pltpu.bitcast(bits, jnp.uint32)
    thresh = jnp.uint32(int(p * float(2**32 - 1)))
    keep = u > thresh
    return jnp.where(keep, x * (1.0 / (1.0 - p)), jnp.zeros_like(x))


# ----------------------------------------------------------------------------
# Kernel 1: stem conv + SiLU -> pointwise + SiLU -> GAP accumulate
# ----------------------------------------------------------------------------
def _stem_gap_kernel(patch_ref,                 # (t_sp, k_real) bf16
                     w_stem_ref, b_stem_ref,    # (KPAD, CSTEM) bf16, (1, CSTEM) f32
                     w_pw_ref, b_pw_ref,        # (CSTEM, CFEAT) bf16, (1, CFEAT) f32
                     feat_ref,                  # (1, 1, CFEAT) f32 output (GAP acc)
                     pad_ref,                   # (t_sp, KPAD) bf16 VMEM scratch
                     *, hwo, t_sp, k_real):
    s = pl.program_id(1)
    n_sp = pl.num_programs(1)

    @pl.when(s == 0)
    def _():
        feat_ref[...] = jnp.zeros_like(feat_ref)
        # Zero once per batch row; lanes [0, k_real) get overwritten each step,
        # lanes [k_real, KPAD) stay zero so the 128-wide matmul is exact.
        pad_ref[...] = jnp.zeros_like(pad_ref)

    pad_ref[:, :k_real] = patch_ref[...]

    # stem 3x3/s2 conv as im2col matmul (bf16 x bf16 -> f32 accumulation) + SiLU
    h1 = jnp.dot(pad_ref[...], w_stem_ref[...],
                 preferred_element_type=jnp.float32) + b_stem_ref[...]
    h1 = _silu(h1)

    # pointwise expansion (MBConv-stack stand-in) + SiLU
    h2 = jnp.dot(h1.astype(jnp.bfloat16), w_pw_ref[...],
                 preferred_element_type=jnp.float32) + b_pw_ref[...]
    h2 = _silu(h2)

    def _accumulate(v):
        feat_ref[...] += jnp.sum(v, axis=0, keepdims=True).reshape(feat_ref.shape)

    if hwo % t_sp != 0:
        # Only the last spatial tile contains zero-padded rows -> mask only there.
        @pl.when(s == n_sp - 1)
        def _():
            row = s * t_sp + jax.lax.broadcasted_iota(jnp.int32, (t_sp, 1), 0)
            _accumulate(jnp.where(row < hwo, h2, 0.0))

        @pl.when(s != n_sp - 1)
        def _():
            _accumulate(h2)
    else:
        _accumulate(h2)

    @pl.when(s == n_sp - 1)
    def _():
        feat_ref[...] = feat_ref[...] * (1.0 / float(hwo))      # GAP mean


# ----------------------------------------------------------------------------
# Kernel 2: dropout(0.2) -> classifier -> fc1 -> ReLU -> dropout(0.5) -> fc2
# (batched over all rows, fc1/fc2 weights tiled over the grid axis)
# ----------------------------------------------------------------------------
def _head_kernel(seed_ref,                  # (1,) int32 SMEM (scalar prefetch)
                 feat_ref,                  # (B_pad, CFEAT) f32
                 w_cls_ref, b_cls_ref,      # (CFEAT, DCLS) bf16, (1, DCLS) f32
                 w1_ref, b1_ref,            # (DCLS, TFC1) bf16, (1, TFC1) f32
                 w2_ref, b2_ref,            # (TFC1, NOUT_PAD) bf16, (1, NOUT_PAD) f32
                 out_ref,                   # (B_pad, NOUT_PAD) f32
                 hcls_ref,                  # (B_pad, DCLS) f32 VMEM scratch
                 *, training):
    j = pl.program_id(0)
    n_j = pl.num_programs(0)

    @pl.when(j == 0)
    def _():
        feat = feat_ref[...]
        if training:
            # NOTE: caller must vary `seed` per training step.
            pltpu.prng_seed(seed_ref[0])
            feat = _dropout(feat, 0.2, pltpu.prng_random_bits(feat.shape))
        hcls_ref[...] = jnp.dot(feat.astype(jnp.bfloat16), w_cls_ref[...],
                                preferred_element_type=jnp.float32) + b_cls_ref[...]
        out_ref[...] = jnp.zeros_like(out_ref)

    # fc1 column tile -> ReLU -> dropout(0.5) -> fc2 row tile, accumulated.
    h = jnp.dot(hcls_ref[...].astype(jnp.bfloat16), w1_ref[...],
                preferred_element_type=jnp.float32) + b1_ref[...]
    h = jnp.maximum(h, 0.0)                                     # self.act = nn.ReLU()
    if training:
        pltpu.prng_seed(seed_ref[0] + 7919 * (j + 1))
        h = _dropout(h, 0.5, pltpu.prng_random_bits(h.shape))
    out_ref[...] += jnp.dot(h.astype(jnp.bfloat16), w2_ref[...],
                            preferred_element_type=jnp.float32)

    @pl.when(j == n_j - 1)
    def _():
        out_ref[...] += b2_ref[...]


# ----------------------------------------------------------------------------
# Glue: im2col for the 3x3 / stride-2 / pad-1 stem conv (NHWC)
# ----------------------------------------------------------------------------
def _im2col_3x3_s2(x):
    B, H, W, C = x.shape
    Ho, Wo = H // 2, W // 2
    xp = jnp.pad(x, ((0, 0), (1, 1), (1, 1), (0, 0)))
    cols = []
    for ki in range(3):
        for kj in range(3):
            cols.append(xp[:, ki:ki + 2 * Ho:2, kj:kj + 2 * Wo:2, :])
    patches = jnp.concatenate(cols, axis=-1)                    # (B, Ho, Wo, 9*C)
    return patches.reshape(B, Ho * Wo, 9 * C), Ho * Wo


# ----------------------------------------------------------------------------
# Parameter init (deterministic synthetic weights; shapes mirror the module,
# shrunk to small test sizes) + padding/casting to TPU layouts.
# ----------------------------------------------------------------------------
def init_params(key, c_in=4, c_stem=32, c_feat=CFEAT, d_cls=DCLS,
                d_fc1=DFC1, n_out=NOUT):
    ks = jax.random.split(key, 8)

    def dense(k, fan_in, shape):
        return jax.random.normal(k, shape, jnp.float32) / jnp.sqrt(float(fan_in))

    return {
        # stem conv 3x3/s2 (BatchNorm folded into scale=1 / bias)
        "w_stem": dense(ks[0], 9 * c_in, (9 * c_in, c_stem)),
        "b_stem": 0.01 * jax.random.normal(ks[1], (c_stem,), jnp.float32),
        # pointwise expansion (stand-in for the MBConv stack)
        "w_pw": dense(ks[2], c_stem, (c_stem, c_feat)),
        "b_pw": 0.01 * jax.random.normal(ks[3], (c_feat,), jnp.float32),
        # backbone.classifier[1] = Linear(lastInput, 8000)   (shrunk: c_feat -> d_cls)
        "w_cls": dense(ks[4], c_feat, (c_feat, d_cls)),
        "b_cls": jnp.zeros((d_cls,), jnp.float32),
        # fc1 = Linear(8000, 16000)                           (shrunk: d_cls -> d_fc1)
        "w1": dense(ks[5], d_cls, (d_cls, d_fc1)),
        "b1": jnp.zeros((d_fc1,), jnp.float32),
        # fc2 = Linear(16000, 5)
        "w2": dense(ks[6], d_fc1, (d_fc1, n_out)),
        "b2": jnp.zeros((n_out,), jnp.float32),
    }


def pad_params_for_tpu(p):
    """Zero-pad weights to lane-dense widths and cast matmul operands to bf16.

    Zero padding is numerically exact: padded stem channels produce silu(0)=0,
    padded rows/columns contribute 0 to downstream matmuls, and padded fc2
    output columns are sliced off in the wrapper."""
    def zpad(a, shape):
        out = jnp.zeros(shape, a.dtype)
        return out.at[tuple(slice(0, s) for s in a.shape)].set(a)

    return {
        "w_stem": zpad(p["w_stem"], (KPAD, CSTEM)).astype(jnp.bfloat16),
        "b_stem": zpad(p["b_stem"].reshape(1, -1), (1, CSTEM)),
        "w_pw":   zpad(p["w_pw"], (CSTEM, CFEAT)).astype(jnp.bfloat16),
        "b_pw":   p["b_pw"].reshape(1, CFEAT),
        "w_cls":  p["w_cls"].astype(jnp.bfloat16),
        "b_cls":  p["b_cls"].reshape(1, DCLS),
        "w1":     p["w1"].astype(jnp.bfloat16),
        "b1":     p["b1"].reshape(1, DFC1),
        "w2":     zpad(p["w2"], (DFC1, NOUT_PAD)).astype(jnp.bfloat16),
        "b2":     zpad(p["b2"].reshape(1, -1), (1, NOUT_PAD)),
    }


# ----------------------------------------------------------------------------
# Forward pass
# ----------------------------------------------------------------------------
def item_match_efficientnet_forward(x_nchw, padded_params, seed, training=False):
    # layout: NCHW (PyTorch) -> NHWC for the conv/matmul kernel
    x = jnp.transpose(x_nchw, (0, 2, 3, 1)).astype(jnp.float32)
    B = x.shape[0]

    patches, hwo = _im2col_3x3_s2(x)                     # (B, HWo, 9*Cin), f32
    k_real = patches.shape[-1]
    assert k_real <= KPAD, "stem contraction exceeds padded width"

    # Large spatial row tiles: fewer grid steps + better DMA efficiency; the
    # double-buffered (t_sp, 36) bf16 patch tile is tiny even at 1024 rows.
    t_sp = min(1024, _round_up(hwo, 8))
    n_sp = pl.cdiv(hwo, t_sp)
    hwo_pad = n_sp * t_sp

    # Keep K = 9*Cin (=36) in HBM: no lane padding of the patch stream.
    patches = jnp.pad(patches, ((0, 0), (0, hwo_pad - hwo), (0, 0)))
    patches2d = patches.reshape(B * hwo_pad, k_real).astype(jnp.bfloat16)

    p = padded_params

    # ---- kernel 1: stem + pointwise + global average pool ------------------
    stem_kernel = functools.partial(_stem_gap_kernel, hwo=hwo, t_sp=t_sp,
                                    k_real=k_real)

    def _const(shape):
        return pl.BlockSpec(shape, lambda b, s: (0,) * len(shape))

    feat = pl.pallas_call(
        stem_kernel,
        out_shape=jax.ShapeDtypeStruct((B, 1, CFEAT), jnp.float32),
        grid_spec=pltpu.PrefetchScalarGridSpec(
            num_scalar_prefetch=0,
            grid=(B, n_sp),
            in_specs=[
                # im2col patch rows for (batch b, spatial tile s)
                pl.BlockSpec((t_sp, k_real), lambda b, s: (b * n_sp + s, 0)),
                # small stem weights stay resident in VMEM
                _const((KPAD, CSTEM)), _const((1, CSTEM)),
                _const((CSTEM, CFEAT)), _const((1, CFEAT)),
            ],
            out_specs=pl.BlockSpec((1, 1, CFEAT), lambda b, s: (b, 0, 0)),
            scratch_shapes=[pltpu.VMEM((t_sp, KPAD), jnp.bfloat16)],
        ),
        compiler_params=pltpu.CompilerParams(
            dimension_semantics=("parallel", "arbitrary"),
            vmem_limit_bytes=32 * 1024 * 1024,
        ),
    )(patches2d, p["w_stem"], p["b_stem"], p["w_pw"], p["b_pw"])

    # ---- kernel 2: classifier / fc1 / ReLU / dropout / fc2 head ------------
    b_pad = _round_up(B, 8)                              # batched M >= 8 sublanes
    feat2d = jnp.pad(feat.reshape(B, CFEAT), ((0, b_pad - B), (0, 0)))
    seed_arr = jnp.asarray(seed, dtype=jnp.int32).reshape((1,))
    n_f1 = DFC1 // TFC1

    head_kernel = functools.partial(_head_kernel, training=training)

    out = pl.pallas_call(
        head_kernel,
        out_shape=jax.ShapeDtypeStruct((b_pad, NOUT_PAD), jnp.float32),
        grid_spec=pltpu.PrefetchScalarGridSpec(
            num_scalar_prefetch=1,                       # dropout seed -> SMEM
            grid=(n_f1,),
            in_specs=[
                pl.BlockSpec((b_pad, CFEAT), lambda j, *_: (0, 0)),
                pl.BlockSpec((CFEAT, DCLS), lambda j, *_: (0, 0)),
                pl.BlockSpec((1, DCLS), lambda j, *_: (0, 0)),
                pl.BlockSpec((DCLS, TFC1), lambda j, *_: (0, j)),   # fc1 col tile
                pl.BlockSpec((1, TFC1), lambda j, *_: (0, j)),
                pl.BlockSpec((TFC1, NOUT_PAD), lambda j, *_: (j, 0)),  # fc2 row tile
                pl.BlockSpec((1, NOUT_PAD), lambda j, *_: (0, 0)),
            ],
            out_specs=pl.BlockSpec((b_pad, NOUT_PAD), lambda j, *_: (0, 0)),
            scratch_shapes=[pltpu.VMEM((b_pad, DCLS), jnp.float32)],
        ),
        compiler_params=pltpu.CompilerParams(
            dimension_semantics=("arbitrary",),
        ),
    )(seed_arr, feat2d, p["w_cls"], p["b_cls"], p["w1"], p["b1"],
      p["w2"], p["b2"])

    return out[:B, :NOUT]                                # (B, 5)


if __name__ == "__main__":
    key = jax.random.PRNGKey(0)
    k_param, k_x = jax.random.split(key)

    params = pad_params_for_tpu(init_params(k_param))
    x = jax.random.normal(k_x, (2, 4, 16, 16), jnp.float32)   # NCHW like PyTorch

    # jit fuses the transpose/pad/im2col/cast preprocessing with the two
    # pallas_calls into one XLA program (no repeated HBM materialization).
    fwd = jax.jit(item_match_efficientnet_forward, static_argnames=("training",))

    # training=False == eval-mode dropout (identity), deterministic output.
    out = jax.block_until_ready(fwd(x, params, 0, training=False))
    assert out.shape == (2, 5) and out.dtype == jnp.float32
    print("KERNEL_OK")
</pallas_src>

<mosaic_0001>
module attributes {stable_mosaic.version = 11 : i64} {
  func.func @_head_kernel(%arg0: i32, %arg1: memref<1xi32, #tpu.memory_space<smem>>, %arg2: memref<8x128xf32, #tpu.memory_space<vmem>>, %arg3: memref<128x256xbf16, #tpu.memory_space<vmem>>, %arg4: memref<1x256xf32, #tpu.memory_space<vmem>>, %arg5: memref<256x256xbf16, #tpu.memory_space<vmem>>, %arg6: memref<1x256xf32, #tpu.memory_space<vmem>>, %arg7: memref<256x128xbf16, #tpu.memory_space<vmem>>, %arg8: memref<1x128xf32, #tpu.memory_space<vmem>>, %arg9: memref<8x128xf32, #tpu.memory_space<vmem>>, %arg10: memref<8x256xf32, #tpu.memory_space<vmem>>) attributes {dimension_semantics = [#tpu.dimension_semantics<arbitrary>], iteration_bounds = array<i64: 2>, scalar_prefetch = 1 : i64, scratch_operands = 1 : i64, tpu.core_type = #tpu.core_type<tc>, window_params = [{pipeline_mode = #tpu.pipeline_mode<synchronous>, transform_indices = @transform_0, window_bounds = array<i64: 8, 128>}, {pipeline_mode = #tpu.pipeline_mode<synchronous>, transform_indices = @transform_1, window_bounds = array<i64: 128, 256>}, {pipeline_mode = #tpu.pipeline_mode<synchronous>, transform_indices = @transform_2, window_bounds = array<i64: 1, 256>}, {transform_indices = @transform_3, window_bounds = array<i64: 256, 256>}, {transform_indices = @transform_4, window_bounds = array<i64: 1, 256>}, {transform_indices = @transform_5, window_bounds = array<i64: 256, 128>}, {pipeline_mode = #tpu.pipeline_mode<synchronous>, transform_indices = @transform_6, window_bounds = array<i64: 1, 128>}, {pipeline_mode = #tpu.pipeline_mode<synchronous>, transform_indices = @transform_7, window_bounds = array<i64: 8, 128>}]} {
    %c0_i32 = arith.constant 0 : i32
    %0 = arith.cmpi eq, %arg0, %c0_i32 : i32
    %1 = arith.extui %0 : i1 to i32
    %c0_i32_0 = arith.constant 0 : i32
    %2 = arith.cmpi ne, %1, %c0_i32_0 : i32
    scf.if %2 {
      %c0_15 = arith.constant 0 : index
      %c0_16 = arith.constant 0 : index
      %21 = vector.load %arg2[%c0_15, %c0_16] : memref<8x128xf32, #tpu.memory_space<vmem>>, vector<8x128xf32>
      %22 = arith.truncf %21 : vector<8x128xf32> to vector<8x128xbf16>
      %c0_17 = arith.constant 0 : index
      %c0_18 = arith.constant 0 : index
      %23 = vector.load %arg3[%c0_17, %c0_18] : memref<128x256xbf16, #tpu.memory_space<vmem>>, vector<128x256xbf16>
      %cst_19 = arith.constant dense<0.000000e+00> : vector<8x256xf32>
      %24 = tpu.matmul %22, %23, %cst_19 {dimension_numbers = #tpu.dot_dimension_numbers<[1], [0], [0], [1], [0, 0, 1, 1], [], []>} : vector<8x128xbf16>, vector<128x256xbf16>, vector<8x256xf32> -> vector<8x256xf32>
      %c0_20 = arith.constant 0 : index
      %c0_21 = arith.constant 0 : index
      %25 = vector.load %arg4[%c0_20, %c0_21] : memref<1x256xf32, #tpu.memory_space<vmem>>, vector<1x256xf32>
      %26 = vector.broadcast %25 : vector<1x256xf32> to vector<8x256xf32>
      %27 = arith.addf %24, %26 : vector<8x256xf32>
      %c0_22 = arith.constant 0 : index
      %c0_23 = arith.constant 0 : index
      %28 = vector.load %arg10[%c0_22, %c0_23] : memref<8x256xf32, #tpu.memory_space<vmem>>, vector<8x256xf32>
      tpu.vector_store %arg10[%c0_22, %c0_23], %27 {strides = array<i32>} : memref<8x256xf32, #tpu.memory_space<vmem>>, vector<8x256xf32>,
      %cst_24 = arith.constant 0.000000e+00 : f32
      %29 = vector.broadcast %cst_24 : f32 to vector<8x128xf32>
      %c0_25 = arith.constant 0 : index
      %c0_26 = arith.constant 0 : index
      %30 = vector.load %arg9[%c0_25, %c0_26] : memref<8x128xf32, #tpu.memory_space<vmem>>, vector<8x128xf32>
      tpu.vector_store %arg9[%c0_25, %c0_26], %29 {strides = array<i32>} : memref<8x128xf32, #tpu.memory_space<vmem>>, vector<8x128xf32>,
    } else {
    }
    %c0 = arith.constant 0 : index
    %c0_1 = arith.constant 0 : index
    %3 = vector.load %arg10[%c0, %c0_1] : memref<8x256xf32, #tpu.memory_space<vmem>>, vector<8x256xf32>
    %4 = arith.truncf %3 : vector<8x256xf32> to vector<8x256xbf16>
    %c0_2 = arith.constant 0 : index
    %c0_3 = arith.constant 0 : index
    %5 = vector.load %arg5[%c0_2, %c0_3] : memref<256x256xbf16, #tpu.memory_space<vmem>>, vector<256x256xbf16>
    %cst = arith.constant dense<0.000000e+00> : vector<8x256xf32>
    %6 = tpu.matmul %4, %5, %cst {dimension_numbers = #tpu.dot_dimension_numbers<[1], [0], [0], [1], [0, 0, 1, 1], [], []>} : vector<8x256xbf16>, vector<256x256xbf16>, vector<8x256xf32> -> vector<8x256xf32>
    %c0_4 = arith.constant 0 : index
    %c0_5 = arith.constant 0 : index
    %7 = vector.load %arg6[%c0_4, %c0_5] : memref<1x256xf32, #tpu.memory_space<vmem>>, vector<1x256xf32>
    %8 = vector.broadcast %7 : vector<1x256xf32> to vector<8x256xf32>
    %9 = arith.addf %6, %8 : vector<8x256xf32>
    %cst_6 = arith.constant 0.000000e+00 : f32
    %10 = vector.broadcast %cst_6 : f32 to vector<8x256xf32>
    %11 = arith.maximumf %9, %10 : vector<8x256xf32>
    %c0_7 = arith.constant 0 : index
    %c0_8 = arith.constant 0 : index
    %12 = vector.load %arg9[%c0_7, %c0_8] : memref<8x128xf32, #tpu.memory_space<vmem>>, vector<8x128xf32>
    %13 = arith.truncf %11 : vector<8x256xf32> to vector<8x256xbf16>
    %c0_9 = arith.constant 0 : index
    %c0_10 = arith.constant 0 : index
    %14 = vector.load %arg7[%c0_9, %c0_10] : memref<256x128xbf16, #tpu.memory_space<vmem>>, vector<256x128xbf16>
    %cst_11 = arith.constant dense<0.000000e+00> : vector<8x128xf32>
    %15 = tpu.matmul %13, %14, %cst_11 {dimension_numbers = #tpu.dot_dimension_numbers<[1], [0], [0], [1], [0, 0, 1, 1], [], []>} : vector<8x256xbf16>, vector<256x128xbf16>, vector<8x128xf32> -> vector<8x128xf32>
    %16 = arith.addf %12, %15 : vector<8x128xf32>
    %c0_12 = arith.constant 0 : index
    %c0_13 = arith.constant 0 : index
    %17 = vector.load %arg9[%c0_12, %c0_13] : memref<8x128xf32, #tpu.memory_space<vmem>>, vector<8x128xf32>
    tpu.vector_store %arg9[%c0_12, %c0_13], %16 {strides = array<i32>} : memref<8x128xf32, #tpu.memory_space<vmem>>, vector<8x128xf32>,
    %c1_i32 = arith.constant 1 : i32
    %18 = arith.cmpi eq, %arg0, %c1_i32 : i32
    %19 = arith.extui %18 : i1 to i32
    %c0_i32_14 = arith.constant 0 : i32
    %20 = arith.cmpi ne, %19, %c0_i32_14 : i32
    scf.if %20 {
      %c0_15 = arith.constant 0 : index
      %c0_16 = arith.constant 0 : index
      %21 = vector.load %arg9[%c0_15, %c0_16] : memref<8x128xf32, #tpu.memory_space<vmem>>, vector<8x128xf32>
      %c0_17 = arith.constant 0 : index
      %c0_18 = arith.constant 0 : index
      %22 = vector.load %arg8[%c0_17, %c0_18] : memref<1x128xf32, #tpu.memory_space<vmem>>, vector<1x128xf32>
      %23 = vector.broadcast %22 : vector<1x128xf32> to vector<8x128xf32>
      %24 = arith.addf %21, %23 : vector<8x128xf32>
      %c0_19 = arith.constant 0 : index
      %c0_20 = arith.constant 0 : index
      %25 = vector.load %arg9[%c0_19, %c0_20] : memref<8x128xf32, #tpu.memory_space<vmem>>, vector<8x128xf32>
      tpu.vector_store %arg9[%c0_19, %c0_20], %24 {strides = array<i32>} : memref<8x128xf32, #tpu.memory_space<vmem>>, vector<8x128xf32>,
    } else {
    }
    return
  }
  func.func @transform_0(%arg0: i32, %arg1: memref<1xi32, #tpu.memory_space<smem>>) -> (i32, i32) {
    %c0_i32 = arith.constant 0 : i32
    %c0_i32_0 = arith.constant 0 : i32
    %c0_i32_1 = arith.constant 0 : i32
    return %c0_i32, %c0_i32_0 : i32, i32
  }
  func.func @transform_1(%arg0: i32, %arg1: memref<1xi32, #tpu.memory_space<smem>>) -> (i32, i32) {
    %c0_i32 = arith.constant 0 : i32
    %c0_i32_0 = arith.constant 0 : i32
    %c0_i32_1 = arith.constant 0 : i32
    return %c0_i32, %c0_i32_0 : i32, i32
  }
  func.func @transform_2(%arg0: i32, %arg1: memref<1xi32, #tpu.memory_space<smem>>) -> (i32, i32) {
    %c0_i32 = arith.constant 0 : i32
    %c0_i32_0 = arith.constant 0 : i32
    %c0_i32_1 = arith.constant 0 : i32
    return %c0_i32, %c0_i32_0 : i32, i32
  }
  func.func @transform_3(%arg0: i32, %arg1: memref<1xi32, #tpu.memory_space<smem>>) -> (i32, i32) {
    %c0_i32 = arith.constant 0 : i32
    %c0_i32_0 = arith.constant 0 : i32
    return %c0_i32, %arg0 : i32, i32
  }
  func.func @transform_4(%arg0: i32, %arg1: memref<1xi32, #tpu.memory_space<smem>>) -> (i32, i32) {
    %c0_i32 = arith.constant 0 : i32
    %c0_i32_0 = arith.constant 0 : i32
    return %c0_i32, %arg0 : i32, i32
  }
  func.func @transform_5(%arg0: i32, %arg1: memref<1xi32, #tpu.memory_space<smem>>) -> (i32, i32) {
    %c0_i32 = arith.constant 0 : i32
    %c0_i32_0 = arith.constant 0 : i32
    return %arg0, %c0_i32 : i32, i32
  }
  func.func @transform_6(%arg0: i32, %arg1: memref<1xi32, #tpu.memory_space<smem>>) -> (i32, i32) {
    %c0_i32 = arith.constant 0 : i32
    %c0_i32_0 = arith.constant 0 : i32
    %c0_i32_1 = arith.constant 0 : i32
    return %c0_i32, %c0_i32_0 : i32, i32
  }
  func.func @transform_7(%arg0: i32, %arg1: memref<1xi32, #tpu.memory_space<smem>>) -> (i32, i32) {
    %c0_i32 = arith.constant 0 : i32
    %c0_i32_0 = arith.constant 0 : i32
    %c0_i32_1 = arith.constant 0 : i32
    return %c0_i32, %c0_i32_0 : i32, i32
  }
}

module attributes {stable_mosaic.version = 11 : i64} {
  func.func @_stem_gap_kernel(%arg0: i32, %arg1: i32, %arg2: memref<64x36xbf16, #tpu.memory_space<vmem>>, %arg3: memref<128x128xbf16, #tpu.memory_space<vmem>>, %arg4: memref<1x128xf32, #tpu.memory_space<vmem>>, %arg5: memref<128x128xbf16, #tpu.memory_space<vmem>>, %arg6: memref<1x128xf32, #tpu.memory_space<vmem>>, %arg7: memref<1x1x128xf32, #tpu.memory_space<vmem>>, %arg8: memref<64x128xbf16, #tpu.memory_space<vmem>>) attributes {dimension_semantics = [#tpu.dimension_semantics<parallel>, #tpu.dimension_semantics<arbitrary>], iteration_bounds = array<i64: 2, 1>, scalar_prefetch = 0 : i64, scratch_operands = 1 : i64, tpu.core_type = #tpu.core_type<tc>, window_params = [{transform_indices = @transform_0, window_bounds = array<i64: 64, 36>}, {pipeline_mode = #tpu.pipeline_mode<synchronous>, transform_indices = @transform_1, window_bounds = array<i64: 128, 128>}, {pipeline_mode = #tpu.pipeline_mode<synchronous>, transform_indices = @transform_2, window_bounds = array<i64: 1, 128>}, {pipeline_mode = #tpu.pipeline_mode<synchronous>, transform_indices = @transform_3, window_bounds = array<i64: 128, 128>}, {pipeline_mode = #tpu.pipeline_mode<synchronous>, transform_indices = @transform_4, window_bounds = array<i64: 1, 128>}, {transform_indices = @transform_5, window_bounds = array<i64: 1, 1, 128>}]} {
    %c0_i32 = arith.constant 0 : i32
    %0 = arith.cmpi eq, %arg1, %c0_i32 : i32
    %1 = arith.extui %0 : i1 to i32
    %c0_i32_0 = arith.constant 0 : i32
    %2 = arith.cmpi ne, %1, %c0_i32_0 : i32
    scf.if %2 {
      %cst_26 = arith.constant 0.000000e+00 : f32
      %38 = vector.broadcast %cst_26 : f32 to vector<1x1x128xf32>
      %c0_27 = arith.constant 0 : index
      %c0_28 = arith.constant 0 : index
      %c0_29 = arith.constant 0 : index
      %39 = vector.load %arg7[%c0_27, %c0_28, %c0_29] : memref<1x1x128xf32, #tpu.memory_space<vmem>>, vector<1x1x128xf32>
      tpu.vector_store %arg7[%c0_27, %c0_28, %c0_29], %38 {strides = array<i32>} : memref<1x1x128xf32, #tpu.memory_space<vmem>>, vector<1x1x128xf32>,
      %cst_30 = arith.constant 0.000000e+00 : bf16
      %40 = vector.broadcast %cst_30 : bf16 to vector<64x128xbf16>
      %c0_31 = arith.constant 0 : index
      %c0_32 = arith.constant 0 : index
      %41 = vector.load %arg8[%c0_31, %c0_32] : memref<64x128xbf16, #tpu.memory_space<vmem>>, vector<64x128xbf16>
      tpu.vector_store %arg8[%c0_31, %c0_32], %40 {strides = array<i32>} : memref<64x128xbf16, #tpu.memory_space<vmem>>, vector<64x128xbf16>,
    } else {
    }
    %c0 = arith.constant 0 : index
    %c0_1 = arith.constant 0 : index
    %3 = vector.load %arg2[%c0, %c0_1] : memref<64x36xbf16, #tpu.memory_space<vmem>>, vector<64x36xbf16>
    %c0_2 = arith.constant 0 : index
    %c0_3 = arith.constant 0 : index
    %4 = vector.load %arg8[%c0_2, %c0_3] : memref<64x128xbf16, #tpu.memory_space<vmem>>, vector<64x36xbf16>
    tpu.vector_store %arg8[%c0_2, %c0_3], %3 {strides = array<i32>} : memref<64x128xbf16, #tpu.memory_space<vmem>>, vector<64x36xbf16>,
    %c0_4 = arith.constant 0 : index
    %c0_5 = arith.constant 0 : index
    %5 = vector.load %arg8[%c0_4, %c0_5] : memref<64x128xbf16, #tpu.memory_space<vmem>>, vector<64x128xbf16>
    %c0_6 = arith.constant 0 : index
    %c0_7 = arith.constant 0 : index
    %6 = vector.load %arg3[%c0_6, %c0_7] : memref<128x128xbf16, #tpu.memory_space<vmem>>, vector<128x128xbf16>
    %cst = arith.constant dense<0.000000e+00> : vector<64x128xf32>
    %7 = tpu.matmul %5, %6, %cst {dimension_numbers = #tpu.dot_dimension_numbers<[1], [0], [0], [1], [0, 0, 1, 1], [], []>} : vector<64x128xbf16>, vector<128x128xbf16>, vector<64x128xf32> -> vector<64x128xf32>
    %c0_8 = arith.constant 0 : index
    %c0_9 = arith.constant 0 : index
    %8 = vector.load %arg4[%c0_8, %c0_9] : memref<1x128xf32, #tpu.memory_space<vmem>>, vector<1x128xf32>
    %9 = vector.broadcast %8 : vector<1x128xf32> to vector<64x128xf32>
    %10 = arith.addf %7, %9 : vector<64x128xf32>
    %11 = arith.negf %10 : vector<64x128xf32>
    %12 = math.exp %11 : vector<64x128xf32>
    %cst_10 = arith.constant 1.000000e+00 : f32
    %13 = vector.broadcast %cst_10 : f32 to vector<64x128xf32>
    %14 = arith.addf %13, %12 : vector<64x128xf32>
    %15 = arith.divf %13, %14 : vector<64x128xf32>
    %16 = arith.mulf %10, %15 : vector<64x128xf32>
    %17 = arith.truncf %16 : vector<64x128xf32> to vector<64x128xbf16>
    %c0_11 = arith.constant 0 : index
    %c0_12 = arith.constant 0 : index
    %18 = vector.load %arg5[%c0_11, %c0_12] : memref<128x128xbf16, #tpu.memory_space<vmem>>, vector<128x128xbf16>
    %cst_13 = arith.constant dense<0.000000e+00> : vector<64x128xf32>
    %19 = tpu.matmul %17, %18, %cst_13 {dimension_numbers = #tpu.dot_dimension_numbers<[1], [0], [0], [1], [0, 0, 1, 1], [], []>} : vector<64x128xbf16>, vector<128x128xbf16>, vector<64x128xf32> -> vector<64x128xf32>
    %c0_14 = arith.constant 0 : index
    %c0_15 = arith.constant 0 : index
    %20 = vector.load %arg6[%c0_14, %c0_15] : memref<1x128xf32, #tpu.memory_space<vmem>>, vector<1x128xf32>
    %21 = vector.broadcast %20 : vector<1x128xf32> to vector<64x128xf32>
    %22 = arith.addf %19, %21 : vector<64x128xf32>
    %23 = arith.negf %22 : vector<64x128xf32>
    %24 = math.exp %23 : vector<64x128xf32>
    %cst_16 = arith.constant 1.000000e+00 : f32
    %25 = vector.broadcast %cst_16 : f32 to vector<64x128xf32>
    %26 = arith.addf %25, %24 : vector<64x128xf32>
    %27 = arith.divf %25, %26 : vector<64x128xf32>
    %28 = arith.mulf %22, %27 : vector<64x128xf32>
    %c0_17 = arith.constant 0 : index
    %c0_18 = arith.constant 0 : index
    %c0_19 = arith.constant 0 : index
    %29 = vector.load %arg7[%c0_17, %c0_18, %c0_19] : memref<1x1x128xf32, #tpu.memory_space<vmem>>, vector<1x1x128xf32>
    %cst_20 = arith.constant dense<0.000000e+00> : vector<128xf32>
    %30 = vector.multi_reduction <add>, %28, %cst_20 [0] : vector<64x128xf32> to vector<128xf32>
    %31 = vector.shape_cast %30 : vector<128xf32> to vector<1x128xf32>
    %32 = vector.shape_cast %31 : vector<1x128xf32> to vector<1x1x128xf32>
    %33 = arith.addf %29, %32 : vector<1x1x128xf32>
    %c0_21 = arith.constant 0 : index
    %c0_22 = arith.constant 0 : index
    %c0_23 = arith.constant 0 : index
    %34 = vector.load %arg7[%c0_21, %c0_22, %c0_23] : memref<1x1x128xf32, #tpu.memory_space<vmem>>, vector<1x1x128xf32>
    tpu.vector_store %arg7[%c0_21, %c0_22, %c0_23], %33 {strides = array<i32>} : memref<1x1x128xf32, #tpu.memory_space<vmem>>, vector<1x1x128xf32>,
    %c0_i32_24 = arith.constant 0 : i32
    %35 = arith.cmpi eq, %arg1, %c0_i32_24 : i32
    %36 = arith.extui %35 : i1 to i32
    %c0_i32_25 = arith.constant 0 : i32
    %37 = arith.cmpi ne, %36, %c0_i32_25 : i32
    scf.if %37 {
      %c0_26 = arith.constant 0 : index
      %c0_27 = arith.constant 0 : index
      %c0_28 = arith.constant 0 : index
      %38 = vector.load %arg7[%c0_26, %c0_27, %c0_28] : memref<1x1x128xf32, #tpu.memory_space<vmem>>, vector<1x1x128xf32>
      %cst_29 = arith.constant 1.562500e-02 : f32
      %39 = vector.broadcast %cst_29 : f32 to vector<1x1x128xf32>
      %40 = arith.mulf %38, %39 : vector<1x1x128xf32>
      %c0_30 = arith.constant 0 : index
      %c0_31 = arith.constant 0 : index
      %c0_32 = arith.constant 0 : index
      %41 = vector.load %arg7[%c0_30, %c0_31, %c0_32] : memref<1x1x128xf32, #tpu.memory_space<vmem>>, vector<1x1x128xf32>
      tpu.vector_store %arg7[%c0_30, %c0_31, %c0_32], %40 {strides = array<i32>} : memref<1x1x128xf32, #tpu.memory_space<vmem>>, vector<1x1x128xf32>,
    } else {
    }
    return
  }
  func.func @transform_0(%arg0: i32, %arg1: i32) -> (i32, i32) {
    %c1_i32 = arith.constant 1 : i32
    %0 = arith.muli %arg0, %c1_i32 : i32
    %1 = arith.addi %0, %arg1 : i32
    %c0_i32 = arith.constant 0 : i32
    %c0_i32_0 = arith.constant 0 : i32
    return %1, %c0_i32 : i32, i32
  }
  func.func @transform_1(%arg0: i32, %arg1: i32) -> (i32, i32) {
    %c0_i32 = arith.constant 0 : i32
    %c0_i32_0 = arith.constant 0 : i32
    %c0_i32_1 = arith.constant 0 : i32
    return %c0_i32, %c0_i32_0 : i32, i32
  }
  func.func @transform_2(%arg0: i32, %arg1: i32) -> (i32, i32) {
    %c0_i32 = arith.constant 0 : i32
    %c0_i32_0 = arith.constant 0 : i32
    %c0_i32_1 = arith.constant 0 : i32
    return %c0_i32, %c0_i32_0 : i32, i32
  }
  func.func @transform_3(%arg0: i32, %arg1: i32) -> (i32, i32) {
    %c0_i32 = arith.constant 0 : i32
    %c0_i32_0 = arith.constant 0 : i32
    %c0_i32_1 = arith.constant 0 : i32
    return %c0_i32, %c0_i32_0 : i32, i32
  }
  func.func @transform_4(%arg0: i32, %arg1: i32) -> (i32, i32) {
    %c0_i32 = arith.constant 0 : i32
    %c0_i32_0 = arith.constant 0 : i32
    %c0_i32_1 = arith.constant 0 : i32
    return %c0_i32, %c0_i32_0 : i32, i32
  }
  func.func @transform_5(%arg0: i32, %arg1: i32) -> (i32, i32, i32) {
    %c0_i32 = arith.constant 0 : i32
    %c0_i32_0 = arith.constant 0 : i32
    %c0_i32_1 = arith.constant 0 : i32
    return %arg0, %c0_i32, %c0_i32_0 : i32, i32, i32
  }
}

</mosaic_0001>

<bundles_post_ra>
// kernel: item_match_efficientnet_forward.3
= control target key start
LH: loop header
LB: loop body
LE: loop exit
PB: predicated region body
PF: predicated region fallthrough
CT: control target
= control target key end

     0   :  { %s1407_s26 = smov 0   ;;  %s1409_s27 = smov 0   ;;  %s1666_s0 = inlined_call_operand.<no memory space> [shape: s32[1], index: 0, kind: input, shape index: {}]   ;;  %s1667_s1 = inlined_call_operand.vmem [shape: f32[8,128], index: 1, kind: input, shape index: {}]   ;;  %s1668_s2 = inlined_call_operand.vmem [shape: bf16[128,256], index: 2, kind: input, shape index: {}]   ;;  %s1669_s3 = inlined_call_operand.vmem [shape: f32[1,256], index: 3, kind: input, shape index: {}]   ;;  %s1670_s4 = inlined_call_operand.vmem [shape: bf16[256,512], index: 4, kind: input, shape index: {}]   ;;  %s1671_s5 = inlined_call_operand.vmem [shape: f32[1,512], index: 5, kind: input, shape index: {}]   ;;  %s1672_s6 = inlined_call_operand.vmem [shape: bf16[512,128], index: 6, kind: input, shape index: {}]   ;;  %s1673_s7 = inlined_call_operand.vmem [shape: f32[1,128], index: 7, kind: input, shape index: {}]   ;;  %s1674_s8 = inlined_call_operand.vmem [shape: f32[8,128], index: 8, kind: output, shape index: {}]  }
   0x1   :  { %s1411_s28 = smov 0  }
   0x2 LB: > { %s1423_s29 = sadd.s32 4294967295, %s1358_s28   ;;  %s1426_s30 = sadd.s32 1, %s1358_s28   ;;  %s1358_s28 = sphi %s1411_s28, %s1677_s28   ;;  %s1354_s27 = sphi %s1409_s27, %s1676_s27   ;;  %s1350_s26 = sphi %s1407_s26, %s1675_s26  }
   0x3   : > { %s86_s9 = ssub.s32 %s1358_s28, %s1426_s30  ;;  %s89_s10 = sadd.s32 1, %s1354_s27 }
   0x4   : > { %p87_p0 = scmp.eq.s32.totalorder %s86_s9, 0  ;;  %p96_p1 = scmp.ne.s32.totalorder %s1354_s27, %s1350_s26 }
   0x5   : > { %p97_p2 = scmp.eq.s32.totalorder %s1358_s28, 0  ;;  %p1121_p4 = scmp.ge.s32.totalorder %s1358_s28, 2 }
   0x6   : > { %s1435_s11 = scalar_select %p87_p0, %s1354_s27, %s89_s10  }
   0x7   : > { %p98_p3 = por %p97_p2, %p96_p1  ;;  %228 = sbr.rel (%p1121_p4) target bundleno = 34 (0x22), region = 32 }
   0xe   : > { %231 = sbr.rel (!%p98_p3) target bundleno = 34 (0x22), region = 36  ;;  %s233_s12 = sand.u32 (%p98_p3), 1, %s1354_s27  }
   0xf   : > { %s1199_s13 = sshll.u32 (%p98_p3), %s1358_s28, 3  ;;  %s1122_s14 = sshll.u32 (%p98_p3), %s233_s12, 8 }
  0x10   : > { %s1443_s17 = scalar_lea.vmem (%p98_p3), %s1670_s4, %s1199_s13  ;;  %s1448_s18 = scalar_lea.vmem (%p98_p3), [#allocation5], %s1122_s14 }
  0x11   : > { %v328_v0 = vld [vmem:[%s1443_s17] sm:$0xff] (%p98_p3)  ;;  %v330_v1 = vld [vmem:[%s1443_s17 + $0x10] sm:$0xff] (%p98_p3) }
  0x12   : > { %v332_v2 = vld [vmem:[%s1443_s17 + $0x20] sm:$0xff] (%p98_p3)  ;;  %329 = vst [vmem:[%s1448_s18] sm:$0xff] (%p98_p3), %v328_v0  ;;  %331 = vst [vmem:[%s1448_s18 + $0x8] sm:$0xff] (%p98_p3), %v330_v1  ;;  %v334_v3 = vld [vmem:[%s1443_s17 + $0x30] sm:$0xff] (%p98_p3) }
  0x13   : > { %333 = vst [vmem:[%s1448_s18 + $0x10] sm:$0xff] (%p98_p3), %v332_v2  ;;  %v336_v4 = vld [vmem:[%s1443_s17 + $0x40] sm:$0xff] (%p98_p3)  ;;  %v338_v5 = vld [vmem:[%s1443_s17 + $0x50] sm:$0xff] (%p98_p3)  ;;  %335 = vst [vmem:[%s1448_s18 + $0x18] sm:$0xff] (%p98_p3), %v334_v3 }
  0x14   : > { %337 = vst [vmem:[%s1448_s18 + $0x20] sm:$0xff] (%p98_p3), %v336_v4  ;;  %339 = vst [vmem:[%s1448_s18 + $0x28] sm:$0xff] (%p98_p3), %v338_v5  ;;  %v340_v6 = vld [vmem:[%s1443_s17 + $0x60] sm:$0xff] (%p98_p3)  ;;  %v342_v7 = vld [vmem:[%s1443_s17 + $0x70] sm:$0xff] (%p98_p3) }
  0x15   : > { %v344_v8 = vld [vmem:[%s1443_s17 + $0x80] sm:$0xff]  ;;  %341 = vst [vmem:[%s1448_s18 + $0x30] sm:$0xff] %v340_v6  ;;  %343 = vst [vmem:[%s1448_s18 + $0x38] sm:$0xff] %v342_v7  ;;  %v346_v9 = vld [vmem:[%s1443_s17 + $0x90] sm:$0xff] }
  0x16   : > { %345 = vst [vmem:[%s1448_s18 + $0x40] sm:$0xff] %v344_v8  ;;  %v348_v10 = vld [vmem:[%s1443_s17 + $0xa0] sm:$0xff]  ;;  %v350_v11 = vld [vmem:[%s1443_s17 + $0xb0] sm:$0xff]  ;;  %347 = vst [vmem:[%s1448_s18 + $0x48] sm:$0xff] %v346_v9 }
  0x17   : > { %349 = vst [vmem:[%s1448_s18 + $0x50] sm:$0xff] %v348_v10  ;;  %351 = vst [vmem:[%s1448_s18 + $0x58] sm:$0xff] %v350_v11  ;;  %v352_v12 = vld [vmem:[%s1443_s17 + $0xc0] sm:$0xff]  ;;  %v354_v13 = vld [vmem:[%s1443_s17 + $0xd0] sm:$0xff] }
  0x18   : > { %v356_v14 = vld [vmem:[%s1443_s17 + $0xe0] sm:$0xff]  ;;  %353 = vst [vmem:[%s1448_s18 + $0x60] sm:$0xff] %v352_v12  ;;  %355 = vst [vmem:[%s1448_s18 + $0x68] sm:$0xff] %v354_v13  ;;  %v358_v15 = vld [vmem:[%s1443_s17 + $0xf0] sm:$0xff] }
  0x19   : > { %357 = vst [vmem:[%s1448_s18 + $0x70] sm:$0xff] %v356_v14  ;;  %v360_v16 = vld [vmem:[%s1443_s17 + $0x100] sm:$0xff]  ;;  %v362_v17 = vld [vmem:[%s1443_s17 + $0x110] sm:$0xff]  ;;  %359 = vst [vmem:[%s1448_s18 + $0x78] sm:$0xff] %v358_v15 }
  0x1a   : > { %361 = vst [vmem:[%s1448_s18 + $0x80] sm:$0xff] %v360_v16  ;;  %363 = vst [vmem:[%s1448_s18 + $0x88] sm:$0xff] %v362_v17  ;;  %v364_v18 = vld [vmem:[%s1443_s17 + $0x120] sm:$0xff]  ;;  %v366_v19 = vld [vmem:[%s1443_s17 + $0x130] sm:$0xff] }
  0x1b   : > { %v368_v20 = vld [vmem:[%s1443_s17 + $0x140] sm:$0xff]  ;;  %365 = vst [vmem:[%s1448_s18 + $0x90] sm:$0xff] %v364_v18  ;;  %367 = vst [vmem:[%s1448_s18 + $0x98] sm:$0xff] %v366_v19  ;;  %v370_v21 = vld [vmem:[%s1443_s17 + $0x150] sm:$0xff] }
  0x1c   : > { %369 = vst [vmem:[%s1448_s18 + $0xa0] sm:$0xff] %v368_v20  ;;  %v372_v22 = vld [vmem:[%s1443_s17 + $0x160] sm:$0xff]  ;;  %v374_v23 = vld [vmem:[%s1443_s17 + $0x170] sm:$0xff]  ;;  %371 = vst [vmem:[%s1448_s18 + $0xa8] sm:$0xff] %v370_v21 }
  0x1d   : > { %373 = vst [vmem:[%s1448_s18 + $0xb0] sm:$0xff] %v372_v22  ;;  %375 = vst [vmem:[%s1448_s18 + $0xb8] sm:$0xff] %v374_v23  ;;  %v376_v24 = vld [vmem:[%s1443_s17 + $0x180] sm:$0xff]  ;;  %v378_v25 = vld [vmem:[%s1443_s17 + $0x190] sm:$0xff] }
  0x1e   : > { %v380_v26 = vld [vmem:[%s1443_s17 + $0x1a0] sm:$0xff]  ;;  %377 = vst [vmem:[%s1448_s18 + $0xc0] sm:$0xff] %v376_v24  ;;  %379 = vst [vmem:[%s1448_s18 + $0xc8] sm:$0xff] %v378_v25  ;;  %v382_v27 = vld [vmem:[%s1443_s17 + $0x1b0] sm:$0xff] }
  0x1f   : > { %381 = vst [vmem:[%s1448_s18 + $0xd0] sm:$0xff] %v380_v26  ;;  %v384_v28 = vld [vmem:[%s1443_s17 + $0x1c0] sm:$0xff]  ;;  %v386_v29 = vld [vmem:[%s1443_s17 + $0x1d0] sm:$0xff]  ;;  %383 = vst [vmem:[%s1448_s18 + $0xd8] sm:$0xff] %v382_v27 }
  0x20   : > { %385 = vst [vmem:[%s1448_s18 + $0xe0] sm:$0xff] %v384_v28  ;;  %387 = vst [vmem:[%s1448_s18 + $0xe8] sm:$0xff] %v386_v29  ;;  %v388_v30 = vld [vmem:[%s1443_s17 + $0x1e0] sm:$0xff]  ;;  %v390_v31 = vld [vmem:[%s1443_s17 + $0x1f0] sm:$0xff] }
  0x21   : > { %389 = vst [vmem:[%s1448_s18 + $0xf0] sm:$0xff] %v388_v30  ;;  %391 = vst [vmem:[%s1448_s18 + $0xf8] sm:$0xff] %v390_v31 }
  0x22 PF: > { %p1125_p5 = scmp.ge.s32.totalorder %s1358_s28, 1  ;;  %p413_p6 = scmp.lt.s32.totalorder %s1358_s28, 3 }
  0x24   : > { %p414_p7 = pnand %p1125_p5, %p413_p6 }
  0x25   : > { %s420_s19 = sand.u32 (!%p414_p7), 1, %s1350_s26   ;;  %s1127_s20 = sshll.u32 (!%p414_p7), %s1423_s29, 1 }
  0x26   : > { %417 = sbr.rel (%p414_p7) target bundleno = 808 (0x328), region = 82  ;;  %s1126_s21 = sshll.u32 (!%p414_p7), %s420_s19, 8 }
  0x27   : > { %p457_p8 = scmp.lt.s32.totalorder (!%p414_p7), %s1127_s20, 3  ;;  %s1128_s22 = sshll.u32 (!%p414_p7), %s1423_s29, 5 }
  0x28   : > { %p462_p9 = scmp.lt.s32.totalorder (!%p414_p7), %s1128_s22, 63  ;;  %s1527_s26 = scalar_lea.vmem (!%p414_p7), [#allocation5], %s1126_s21 }
  0x29   : > { %p1130_p10 = scmp.ne.s32.totalorder (!%p414_p7), %s1423_s29, 0 }
  0x2d   : > { %s1679_s20 = smov (!%p457_p8, %s1127_s20), 3  ;;  %s1681_s22 = smov (!%p462_p9, %s1128_s22), 63 }
  0x2e   : > { %s459_s24 = scalar_lea.vmem %s1671_s5, %s1679_s20  ;;  %s1129_s25 = sshll.u32 %s1681_s22, 2  ;;  %v1248_v32 = vld [vmem:[%s1668_s2 + $0x4] ss:$8 sps:$4 sm:$0xff] (!%p1130_p10)   ;;  %v1250_v33 = vld [vmem:[%s1668_s2] ss:$8 sps:$4 sm:$0xff] (!%p1130_p10)   ;;  %v1360_v34 = vmov (!%p1130_p10), 0   ;;  %v492_v52 = vlaneseq (!%p1130_p10) }
  0x2f   : > { %s1525_s10 = scalar_lea.vmem %s1672_s6, %s1129_s25  ;;  %471 = sbr.rel (%p1130_p10) target bundleno = 295 (0x127), region = 90  ;;  %614 = vmatprep.mubr.bf16.mxu0 (!%p1130_p10), %v1360_v34  ;;  %582 = vmatprep.subr.bf16.mxu0 (!%p1130_p10), %v1248_v32  ;;  %v1251_v35 = vld [vmem:[%s1668_s2 + $0x14] ss:$8 sps:$4 sm:$0xff] (!%p1130_p10)   ;;  %v1253_v36 = vld [vmem:[%s1668_s2 + $0x10] ss:$8 sps:$4 sm:$0xff] (!%p1130_p10)   ;;  %v472_v49 = vld [vmem:[%s1667_s1] sm:$0xff] (!%p1130_p10) }
  0x30   : > { %583 = vmatpush1.bf16.msra.mxu0 (!%p1130_p10), %v1250_v33  ;;  %v1254_v37 = vld [vmem:[%s1668_s2 + $0x24] ss:$8 sps:$4 sm:$0xff] (!%p1130_p10)   ;;  %v1256_v38 = vld [vmem:[%s1668_s2 + $0x20] ss:$8 sps:$4 sm:$0xff] (!%p1130_p10)   ;;  %v1257_v39 = vld [vmem:[%s1668_s2 + $0x34] ss:$8 sps:$4 sm:$0xff] (!%p1130_p10)   ;;  %v473_v50 = vpack.c.bf16 (!%p1130_p10), %v472_v49, %v472_v49 }
  0x31   : > { %584 = vmatprep.subr.bf16.mxu0 (!%p1130_p10), %v1251_v35  ;;  %v1259_v40 = vld [vmem:[%s1668_s2 + $0x30] ss:$8 sps:$4 sm:$0xff] (!%p1130_p10)   ;;  %v1260_v41 = vld [vmem:[%s1668_s2 + $0x44] ss:$8 sps:$4 sm:$0xff] (!%p1130_p10)   ;;  %v1262_v42 = vld [vmem:[%s1668_s2 + $0x40] ss:$8 sps:$4 sm:$0xff] (!%p1130_p10)  }
  0x32   : > { %v1263_v43 = vld [vmem:[%s1668_s2 + $0x54] ss:$8 sps:$4 sm:$0xff] (!%p1130_p10)   ;;  %v1265_v44 = vld [vmem:[%s1668_s2 + $0x50] ss:$8 sps:$4 sm:$0xff] (!%p1130_p10)   ;;  %v1266_v45 = vld [vmem:[%s1668_s2 + $0x64] ss:$8 sps:$4 sm:$0xff] (!%p1130_p10)  }
  0x33   : > { %v1268_v46 = vld [vmem:[%s1668_s2 + $0x60] ss:$8 sps:$4 sm:$0xff] (!%p1130_p10)   ;;  %v1269_v47 = vld [vmem:[%s1668_s2 + $0x74] ss:$8 sps:$4 sm:$0xff] (!%p1130_p10)   ;;  %v1271_v48 = vld [vmem:[%s1668_s2 + $0x70] ss:$8 sps:$4 sm:$0xff] (!%p1130_p10)  }
  0x34   : > { %585 = vmatpush1.bf16.msra.mxu0 (!%p1130_p10), %v1253_v36  ;;  %v1361_v51 = vmov (!%p1130_p10), 0.0   ;;  %v493_v53 = vshrl.u32 (!%p1130_p10), %v492_v52, 7  ;;  %v490_v55 = vld [vmem:[%s1669_s3] sm:$0x3] (!%p1130_p10) }
  0x35   : > { %586 = vmatprep.subr.bf16.mxu0 (!%p1130_p10), %v1254_v37  ;;  %625 = vst [vmem:[%s1674_s8] sm:$0xff] (!%p1130_p10), %v1361_v51 }
  0x36   : > { %v494_v54 = vsub.s32 0, %v493_v53  ;;  %v498_v56 = vsub.s32 1, %v493_v53 }
  0x38   : > { %587 = vmatpush1.bf16.msra.mxu0 %v1256_v38  ;;  %v495_v57 = vrot.slane %v490_v55, %v494_v54  ;;  %v499_v58 = vrot.slane %v490_v55, %v498_v56 }
  0x39   : > { %588 = vmatprep.subr.bf16.mxu0 %v1257_v39 }
  0x3c   : > { %589 = vmatpush1.bf16.msra.mxu0 %v1259_v40 }
  0x3d   : > { %590 = vmatprep.subr.bf16.mxu0 %v1260_v41 }
  0x40   : > { %591 = vmatpush1.bf16.msra.mxu0 %v1262_v42 }
  0x41   : > { %592 = vmatprep.subr.bf16.mxu0 %v1263_v43 }
  0x44   : > { %593 = vmatpush1.bf16.msra.mxu0 %v1265_v44 }
  0x45   : > { %594 = vmatprep.subr.bf16.mxu0 %v1266_v45 }
  0x48   : > { %595 = vmatpush1.bf16.msra.mxu0 %v1268_v46 }
  0x49   : > { %596 = vmatprep.subr.bf16.mxu0 %v1269_v47 }
  0x4c   : > { %597 = vmatpush1.bf16.msra.mxu0 %v1271_v48 }
  0x4f   : > { %615 = vmatmul.mubr.bf16.vlgmr.msra.gmra.mrb[0].mxu0 %v473_v50 }
 0x122   : > { %v616_v59 = vpop.f32.mrb[0].mxu0 }
 0x123   : > { %v617_v60 = vadd.f32 %v616_v59, %v495_v57  ;;  %v618_v61 = vpop.f32.mrb[1].mxu0 }
 0x124   : > { %v619_v62 = vadd.f32 %v618_v61, %v499_v58  ;;  %v620_v63 = vpop.f32.mrb[2].mxu0 }
 0x125   : > { %623 = vst [vmem:[#allocation2] sm:$0xff] %v617_v60  ;;  %v621_v0 = vpop.f32.mrb[3].mxu0 }
 0x126   : > { %624 = vst [vmem:[#allocation2 + $0x8] sm:$0xff] %v619_v62 }
 0x127 PF: > { %v1272_v1 = vld [vmem:[%s1527_s26 + $0x4] ss:$8 sps:$4 sm:$0xff]   ;;  %v1274_v2 = vld [vmem:[%s1527_s26] ss:$8 sps:$4 sm:$0xff]   ;;  %v1275_v3 = vld [vmem:[%s1527_s26 + $0x14] ss:$8 sps:$4 sm:$0xff]   ;;  %v664_v53 = vlaneseq }
 0x128   : > { %834 = vmatprep.subr.bf16.mxu0 %v1272_v1  ;;  %v1277_v4 = vld [vmem:[%s1527_s26 + $0x10] ss:$8 sps:$4 sm:$0xff]   ;;  %v1278_v5 = vld [vmem:[%s1527_s26 + $0x24] ss:$8 sps:$4 sm:$0xff]   ;;  %v1280_v6 = vld [vmem:[%s1527_s26 + $0x20] ss:$8 sps:$4 sm:$0xff]  }
 0x129   : > { %835 = vmatpush1.bf16.msra.mxu0 %v1274_v2  ;;  %v1281_v7 = vld [vmem:[%s1527_s26 + $0x34] ss:$8 sps:$4 sm:$0xff]   ;;  %v1283_v8 = vld [vmem:[%s1527_s26 + $0x30] ss:$8 sps:$4 sm:$0xff]   ;;  %v1284_v9 = vld [vmem:[%s1527_s26 + $0x44] ss:$8 sps:$4 sm:$0xff]  }
 0x12a   : > { %836 = vmatprep.subr.bf16.mxu0 %v1275_v3  ;;  %v1286_v10 = vld [vmem:[%s1527_s26 + $0x40] ss:$8 sps:$4 sm:$0xff]   ;;  %v1287_v11 = vld [vmem:[%s1527_s26 + $0x54] ss:$8 sps:$4 sm:$0xff]   ;;  %v1289_v12 = vld [vmem:[%s1527_s26 + $0x50] ss:$8 sps:$4 sm:$0xff]  }
 0x12b   : > { %v1290_v13 = vld [vmem:[%s1527_s26 + $0x64] ss:$8 sps:$4 sm:$0xff]   ;;  %v1292_v14 = vld [vmem:[%s1527_s26 + $0x60] ss:$8 sps:$4 sm:$0xff]   ;;  %v1293_v16 = vld [vmem:[%s1527_s26 + $0x74] ss:$8 sps:$4 sm:$0xff]  }
 0x12c   : > { %v1320_v18 = vld [vmem:[%s1525_s10 + $0x40] sm:$0xff]   ;;  %v1322_v20 = vld [vmem:[%s1525_s10 + $0x48] sm:$0xff]   ;;  %v1324_v23 = vld [vmem:[%s1525_s10 + $0x50] sm:$0xff]   ;;  %v665_v54 = vshrl.u32 %v664_v53, 7  ;;  %p1195_p11 = scmp.ne.s32.totalorder %s1423_s29, 1 }
 0x12d   : > { %837 = vmatpush1.bf16.msra.mxu0 %v1277_v4  ;;  %v627_v15 = vld [vmem:[#allocation2 + $0x8] sm:$0xff]  ;;  %v1321_v19 = vld [vmem:[%s1525_s10] sm:$0xff]   ;;  %1200 = vmatprep.subr.bf16.mxu1 %v1320_v18  ;;  %v1296_v24 = vld [vmem:[%s1527_s26 + $0x84] ss:$8 sps:$4 sm:$0xff]  }
 0x12e   : > { %838 = vmatprep.subr.bf16.mxu0 %v1278_v5  ;;  %v629_v17 = vpack.c.bf16 %v627_v15, %v627_v15  ;;  %v1295_v21 = vld [vmem:[%s1527_s26 + $0x70] ss:$8 sps:$4 sm:$0xff]   ;;  %1201 = vmatpush3.bf16.msra.mxu1 %v1321_v19  ;;  %v1298_v25 = vld [vmem:[%s1527_s26 + $0x80] ss:$8 sps:$4 sm:$0xff]   ;;  %v1299_v28 = vld [vmem:[%s1527_s26 + $0x94] ss:$8 sps:$4 sm:$0xff]  }
 0x12f   : > { %v1323_v22 = vld [vmem:[%s1525_s10 + $0x8] sm:$0xff]   ;;  %1202 = vmatprep.subr.bf16.mxu1 %v1322_v20  ;;  %v1325_v26 = vld [vmem:[%s1525_s10 + $0x10] sm:$0xff]   ;;  %v1326_v27 = vld [vmem:[%s1525_s10 + $0x58] sm:$0xff]   ;;  %v666_v55 = vsub.s32 0, %v665_v54  ;;  %v670_v57 = vsub.s32 1, %v665_v54 }
 0x130   : > { %866 = vmatprep.mubr.bf16.mxu0 %v629_v17  ;;  %v1301_v29 = vld [vmem:[%s1527_s26 + $0x90] ss:$8 sps:$4 sm:$0xff]   ;;  %v1327_v30 = vld [vmem:[%s1525_s10 + $0x18] sm:$0xff]   ;;  %v1305_v36 = vld [vmem:[%s1527_s26 + $0xb4] ss:$8 sps:$4 sm:$0xff]  }
 0x131   : > { %839 = vmatpush1.bf16.msra.mxu0 %v1280_v6  ;;  %v1302_v31 = vld [vmem:[%s1527_s26 + $0xa4] ss:$8 sps:$4 sm:$0xff]   ;;  %v1328_v32 = vld [vmem:[%s1525_s10 + $0x60] sm:$0xff]   ;;  %v1304_v34 = vld [vmem:[%s1527_s26 + $0xa0] ss:$8 sps:$4 sm:$0xff]  }
 0x132   : > { %840 = vmatprep.subr.bf16.mxu0 %v1281_v7  ;;  %1203 = vmatpush3.bf16.msra.mxu1 %v1323_v22  ;;  %v1329_v33 = vld [vmem:[%s1525_s10 + $0x20] sm:$0xff]   ;;  %v1330_v35 = vld [vmem:[%s1525_s10 + $0x68] sm:$0xff]   ;;  %v1308_v39 = vld [vmem:[%s1527_s26 + $0xc4] ss:$8 sps:$4 sm:$0xff]  }
 0x133   : > { %1204 = vmatprep.subr.bf16.mxu1 %v1324_v23  ;;  %v1331_v37 = vld [vmem:[%s1525_s10 + $0x28] sm:$0xff]   ;;  %v1310_v40 = vld [vmem:[%s1527_s26 + $0xc0] ss:$8 sps:$4 sm:$0xff]   ;;  %v1314_v43 = vld [vmem:[%s1527_s26 + $0xe4] ss:$8 sps:$4 sm:$0xff]  }
 0x134   : > { %v1307_v38 = vld [vmem:[%s1527_s26 + $0xb0] ss:$8 sps:$4 sm:$0xff]   ;;  %v1311_v41 = vld [vmem:[%s1527_s26 + $0xd4] ss:$8 sps:$4 sm:$0xff]   ;;  %v1316_v44 = vld [vmem:[%s1527_s26 + $0xe0] ss:$8 sps:$4 sm:$0xff]  }
 0x135   : > { %841 = vmatpush1.bf16.msra.mxu0 %v1283_v8  ;;  %v1313_v42 = vld [vmem:[%s1527_s26 + $0xd0] ss:$8 sps:$4 sm:$0xff]   ;;  %v1317_v45 = vld [vmem:[%s1527_s26 + $0xf4] ss:$8 sps:$4 sm:$0xff]   ;;  %v1332_v49 = vld [vmem:[%s1525_s10 + $0x70] sm:$0xff]  }
 0x136   : > { %842 = vmatprep.subr.bf16.mxu0 %v1284_v9  ;;  %1205 = vmatpush3.bf16.msra.mxu1 %v1325_v26  ;;  %v1319_v46 = vld [vmem:[%s1527_s26 + $0xf0] ss:$8 sps:$4 sm:$0xff]   ;;  %v1333_v50 = vld [vmem:[%s1525_s10 + $0x30] sm:$0xff]   ;;  %v1334_v51 = vld [vmem:[%s1525_s10 + $0x78] sm:$0xff]  }
 0x137   : > { %1206 = vmatprep.subr.bf16.mxu1 %v1326_v27  ;;  %v626_v47 = vld [vmem:[#allocation2] sm:$0xff]  ;;  %v1335_v52 = vld [vmem:[%s1525_s10 + $0x38] sm:$0xff]  }
 0x138   : > { %v628_v48 = vpack.c.bf16 %v626_v47, %v626_v47  ;;  %v662_v56 = vld [vmem:[%s459_s24] sm:$0x3] }
 0x139   : > { %843 = vmatpush1.bf16.msra.mxu0 %v1286_v10  ;;  %v667_v58 = vrot.slane %v662_v56, %v666_v55  ;;  %v671_v59 = vrot.slane %v662_v56, %v670_v57  ;;  %v877_v7 = vld [vmem:[%s1674_s8] sm:$0xff] }
 0x13a   : > { %844 = vmatprep.subr.bf16.mxu0 %v1287_v11  ;;  %1207 = vmatpush3.bf16.msra.mxu1 %v1327_v30 }
 0x13b   : > { %1208 = vmatprep.subr.bf16.mxu1 %v1328_v32 }
 0x13d   : > { %845 = vmatpush1.bf16.msra.mxu0 %v1289_v12 }
 0x13e   : > { %846 = vmatprep.subr.bf16.mxu0 %v1290_v13  ;;  %1209 = vmatpush3.bf16.msra.mxu1 %v1329_v33 }
 0x13f   : > { %1210 = vmatprep.subr.bf16.mxu1 %v1330_v35 }
 0x141   : > { %847 = vmatpush1.bf16.msra.mxu0 %v1292_v14  ;;  %v1196_v14 = vld [vmem:[%s1673_s7] ss:$0 sm:$0xff] (!%p1195_p11) }
 0x142   : > { %848 = vmatprep.subr.bf16.mxu0 %v1293_v16  ;;  %1211 = vmatpush3.bf16.msra.mxu1 %v1331_v37 }
 0x143   : > { %1212 = vmatprep.subr.bf16.mxu1 %v1332_v49 }
 0x145   : > { %849 = vmatpush1.bf16.msra.mxu0 %v1295_v21 }
 0x146   : > { %850 = vmatprep.subr.bf16.mxu0 %v1296_v24  ;;  %1213 = vmatpush3.bf16.msra.mxu1 %v1333_v50 }
 0x147   : > { %1214 = vmatprep.subr.bf16.mxu1 %v1334_v51 }
 0x149   : > { %851 = vmatpush1.bf16.msra.mxu0 %v1298_v25 }
 0x14a   : > { %852 = vmatprep.subr.bf16.mxu0 %v1299_v28  ;;  %1215 = vmatpush3.bf16.msra.mxu1 %v1335_v52 }
 0x14d   : > { %853 = vmatpush1.bf16.msra.mxu0 %v1301_v29 }
 0x14e   : > { %854 = vmatprep.subr.bf16.mxu0 %v1302_v31 }
 0x151   : > { %855 = vmatpush1.bf16.msra.mxu0 %v1304_v34 }
 0x152   : > { %856 = vmatprep.subr.bf16.mxu0 %v1305_v36 }
 0x155   : > { %857 = vmatpush1.bf16.msra.mxu0 %v1307_v38 }
 0x156   : > { %858 = vmatprep.subr.bf16.mxu0 %v1308_v39 }
 0x159   : > { %859 = vmatpush1.bf16.msra.mxu0 %v1310_v40 }
 0x15a   : > { %860 = vmatprep.subr.bf16.mxu0 %v1311_v41 }
 0x15d   : > { %861 = vmatpush1.bf16.msra.mxu0 %v1313_v42 }
 0x15e   : > { %862 = vmatprep.subr.bf16.mxu0 %v1314_v43 }
 0x161   : > { %863 = vmatpush1.bf16.msra.mxu0 %v1316_v44 }
 0x162   : > { %864 = vmatprep.subr.bf16.mxu0 %v1317_v45 }
 0x165   : > { %865 = vmatpush1.bf16.msra.mxu0 %v1319_v46 }
 0x168   : > { %867 = vmatmul.mubr.bf16.vlgmr.msra.gmra.mrb[0].mxu0 %v628_v48 }
 0x23b   : > { %v868_v60 = vpop.f32.mrb[0].mxu0 }
 0x23c   : > { %v869_v61 = vadd.f32 %v868_v60, %v667_v58  ;;  %v870_v62 = vpop.f32.mrb[1].mxu0 }
 0x23d   : > { %v871_v63 = vadd.f32 %v870_v62, %v671_v59  ;;  %v872_v0 = vpop.f32.mrb[2].mxu0 }
 0x23e   : > { %v875_v1 = vmax.f32 %v869_v61, 0.0  ;;  %v873_v2 = vpop.f32.mrb[3].mxu0 }
 0x23f   : > { %v876_v3 = vmax.f32 %v871_v63, 0.0 }
 0x240   : > { %v878_v5 = vpack.c.bf16 %v875_v1, %v875_v1 }
 0x241   : > { %v879_v4 = vpack.c.bf16 %v876_v3, %v876_v3 }
 0x243   : > { %1040 = vmatprep.mubr.bf16.mxu1 %v879_v4 }
 0x244   : > { %1041 = vmatmul.mubr.bf16.vlgmr.msra.gmra.mrb[0].mxu1 %v878_v5 }
 0x317   : > { %v1216_v6 = vpop.f32.mrb[0].mxu1  ;;  %1053 = sbr.rel (%p1195_p11) target bundleno = 808 (0x328), region = 94 }
 0x318   : > { %v1217_v8 = vpop.f32.mrb[1].mxu1 }
 0x319   : > { %v1218_v9 = vadd.f32 %v1217_v8, %v1216_v6  ;;  %v1219_v10 = vpop.f32.mrb[2].mxu1 }
 0x31a   : > { %v1220_v11 = vpop.f32.mrb[3].mxu1 }
 0x31b   : > { %v1048_v12 = vadd.f32 %v1218_v9, %v877_v7 }
 0x31d   : > { %1049 = vst [vmem:[%s1674_s8] sm:$0xff] %v1048_v12 }
 0x324   : > { %v1054_v13 = vld [vmem:[%s1674_s8] sm:$0xff] }
 0x325   : > { %v1062_v15 = vadd.f32 %v1196_v14, %v1054_v13 }
 0x327   : > { %1063 = vst [vmem:[%s1674_s8] sm:$0xff] %v1062_v15 }
 0x328 PF: > { %p16_p12 = scmp.ge.s32.totalorder %s1426_s30, 4   ;;  %s1675_s26 = smov %s1354_s27 }
 0x329   : > { %s1676_s27 = smov %s1435_s11  ;;  %s1677_s28 = smov %s1426_s30 }
 0x32a   :  { %18 = sbr.rel (!%p16_p12) target bundleno = 2 (0x2), region = 131 }

// kernel: item_match_efficientnet_forward.2
= control target key start
LH: loop header
LB: loop body
LE: loop exit
PB: predicated region body
PF: predicated region fallthrough
CT: control target
= control target key end

     0   :  { %s1043_s18 = smov 0   ;;  %s1045_s19 = smov 0   ;;  %s1142_s0 = inlined_call_operand.vmem [shape: bf16[128,36], index: 0, kind: input, shape index: {}]   ;;  %s1143_s1 = inlined_call_operand.vmem [shape: bf16[128,128], index: 1, kind: input, shape index: {}]   ;;  %s1144_s2 = inlined_call_operand.vmem [shape: f32[1,128], index: 2, kind: input, shape index: {}]   ;;  %s1145_s3 = inlined_call_operand.vmem [shape: bf16[128,128], index: 3, kind: input, shape index: {}]   ;;  %s1146_s4 = inlined_call_operand.vmem [shape: f32[1,128], index: 4, kind: input, shape index: {}]   ;;  %s1147_s5 = inlined_call_operand.vmem [shape: f32[2,1,128], index: 5, kind: output, shape index: {}]  }
   0x1   :  { %s1047_s20 = smov 0  }
   0x2 LB: > { %s27_s21 = sadd.s32 1, %s1005_s19  ;;  %p762_p0 = scmp.ge.s32.totalorder %s1009_s20, 1  ;;  %s1009_s20 = sphi %s1047_s20, %s15_s20   ;;  %s1005_s19 = sphi %s1045_s19, %s1149_s19   ;;  %s1001_s18 = sphi %s1043_s18, %s1148_s18  }
   0x3   : > { %p29_p1 = scmp.ge.s32.totalorder %s27_s21, 2  ;;  %p204_p2 = scmp.lt.s32.totalorder %s1009_s20, 3 }
   0x5   : > { %s1151_s21 = smov (%p29_p1, %s27_s21), 0  ;;  %p205_p3 = pnand %p762_p0, %p204_p2 }
   0x6   : > { %v903_v0 = vld [vmem:[%s1143_s1] sm:$0xff] (!%p205_p3)   ;;  %s763_s24 = sshll.u32 (!%p205_p3), %s1001_s18, 3  ;;  %v904_v1 = vld [vmem:[%s1143_s1 + $0x8] sm:$0xff] (!%p205_p3)   ;;  %v1011_v2 = vmov (!%p205_p3), 0   ;;  %v905_v3 = vld [vmem:[%s1143_s1 + $0x10] sm:$0xff] (!%p205_p3)   ;;  %vm284_vm0 = vcmask (!%p205_p3), 293888  }
   0x7   : > { %208 = sbr.rel (%p205_p3) target bundleno = 571 (0x23b), region = 40  ;;  %p233_p4 = scmp.lt.s32.totalorder (!%p205_p3), %s763_s24, 15  ;;  %829 = vmatprep.subr.bf16.mxu0 (!%p205_p3), %v903_v0  ;;  %248 = vst [vmem:[#allocation2] sm:$0xff] (!%p205_p3), %v1011_v2  ;;  %249 = vst [vmem:[#allocation2 + $0x8] sm:$0xff] (!%p205_p3), %v1011_v2  ;;  %v906_v4 = vld [vmem:[%s1143_s1 + $0x18] sm:$0xff] (!%p205_p3)   ;;  %v907_v7 = vld [vmem:[%s1143_s1 + $0x20] sm:$0xff] (!%p205_p3)  }
   0x8   : > { %830 = vmatpush3.bf16.msra.mxu0 (!%p205_p3), %v903_v0  ;;  %250 = vst [vmem:[#allocation2 + $0x10] sm:$0xff] (!%p205_p3), %v1011_v2  ;;  %251 = vst [vmem:[#allocation2 + $0x18] sm:$0xff] (!%p205_p3), %v1011_v2  ;;  %v908_v10 = vld [vmem:[%s1143_s1 + $0x28] sm:$0xff] (!%p205_p3)   ;;  %v909_v12 = vld [vmem:[%s1143_s1 + $0x30] sm:$0xff] (!%p205_p3)   ;;  %p239_p5 = scmp.lt.s32.totalorder (!%p205_p3), %s1001_s18, 1 }
   0x9   : > { %831 = vmatprep.subr.bf16.mxu0 (!%p205_p3), %v904_v1  ;;  %v910_v13 = vld [vmem:[%s1143_s1 + $0x38] sm:$0xff] (!%p205_p3)   ;;  %v915_v17 = vld [vmem:[%s1145_s3] sm:$0xff] (!%p205_p3)   ;;  %v916_v18 = vld [vmem:[%s1145_s3 + $0x8] sm:$0xff] (!%p205_p3)  }
   0xa   : > { %853 = vmatprep.subr.bf16.mxu1 (!%p205_p3), %v915_v17  ;;  %v917_v19 = vld [vmem:[%s1145_s3 + $0x10] sm:$0xff] (!%p205_p3)   ;;  %v918_v20 = vld [vmem:[%s1145_s3 + $0x18] sm:$0xff] (!%p205_p3)   ;;  %v919_v21 = vld [vmem:[%s1145_s3 + $0x20] sm:$0xff] (!%p205_p3)  }
   0xb   : > { %854 = vmatpush3.bf16.msra.mxu1 (!%p205_p3), %v915_v17  ;;  %v920_v22 = vld [vmem:[%s1145_s3 + $0x28] sm:$0xff] (!%p205_p3)   ;;  %v921_v23 = vld [vmem:[%s1145_s3 + $0x30] sm:$0xff] (!%p205_p3)   ;;  %v922_v24 = vld [vmem:[%s1145_s3 + $0x38] sm:$0xff] (!%p205_p3)  }
   0xc   : > { %832 = vmatpush3.bf16.msra.mxu0 (!%p205_p3), %v904_v1  ;;  %855 = vmatprep.subr.bf16.mxu1 (!%p205_p3), %v916_v18  ;;  %v769_v25 = vld [vmem:[%s1144_s2] ss:$0 sm:$0xff] (!%p205_p3) }
   0xd   : > { %833 = vmatprep.subr.bf16.mxu0 (!%p205_p3), %v905_v3 }
   0xe   : > { %s1153_s24 = smov (!%p233_p4, %s763_s24), 15  ;;  %s1155_s18 = smov (!%p239_p5, %s1001_s18), 1 }
   0xf   : > { %s764_s29 = sshll.u32 %s1153_s24, 2  ;;  %856 = vmatpush3.bf16.msra.mxu1 %v916_v18  ;;  %s1123_s17 = scalar_lea.vmem %s1147_s5, %s1155_s18 }
  0x10   : > { %s236_s7 = scalar_lea.vmem %s1142_s0, %s764_s29  ;;  %834 = vmatpush3.bf16.msra.mxu0 %v905_v3  ;;  %857 = vmatprep.subr.bf16.mxu1 %v917_v19 }
  0x11   : > { %v911_v5 = vld [vmem:[%s236_s7] sm:$0xff]   ;;  %v912_v6 = vld [vmem:[%s236_s7 + $0x8] sm:$0xff]   ;;  %v913_v8 = vld [vmem:[%s236_s7 + $0x10] sm:$0xff]   ;;  %835 = vmatprep.subr.bf16.mxu0 %v906_v4 }
  0x12   : > { %285 = vst.msk [vmem:[#allocation2] sm:$0xff] %vm284_vm0, %v911_v5  ;;  %286 = vst.msk [vmem:[#allocation2 + $0x8] sm:$0xff] %vm284_vm0, %v912_v6  ;;  %v914_v9 = vld [vmem:[%s236_s7 + $0x18] sm:$0xff]  }
  0x13   : > { %287 = vst.msk [vmem:[#allocation2 + $0x10] sm:$0xff] %vm284_vm0, %v913_v8  ;;  %288 = vst.msk [vmem:[#allocation2 + $0x18] sm:$0xff] %vm284_vm0, %v914_v9  ;;  %858 = vmatpush3.bf16.msra.mxu1 %v917_v19 }
  0x14   : > { %836 = vmatpush3.bf16.msra.mxu0 %v906_v4  ;;  %859 = vmatprep.subr.bf16.mxu1 %v918_v20 }
  0x15   : > { %837 = vmatprep.subr.bf16.mxu0 %v907_v7 }
  0x17   : > { %860 = vmatpush3.bf16.msra.mxu1 %v918_v20 }
  0x18   : > { %838 = vmatpush3.bf16.msra.mxu0 %v907_v7  ;;  %861 = vmatprep.subr.bf16.mxu1 %v919_v21 }
  0x19   : > { %v289_v11 = vld [vmem:[#allocation2] sm:$0xff]  ;;  %839 = vmatprep.subr.bf16.mxu0 %v908_v10  ;;  %v290_v14 = vld [vmem:[#allocation2 + $0x8] sm:$0xff] }
  0x1a   : > { %845 = vmatprep.mubr.bf16.mxu0 %v289_v11  ;;  %v291_v15 = vld [vmem:[#allocation2 + $0x10] sm:$0xff]  ;;  %v292_v16 = vld [vmem:[#allocation2 + $0x18] sm:$0xff] }
  0x1b   : > { %862 = vmatpush3.bf16.msra.mxu1 %v919_v21 }
  0x1c   : > { %840 = vmatpush3.bf16.msra.mxu0 %v908_v10  ;;  %863 = vmatprep.subr.bf16.mxu1 %v920_v22 }
  0x1d   : > { %841 = vmatprep.subr.bf16.mxu0 %v909_v12 }
  0x1f   : > { %864 = vmatpush3.bf16.msra.mxu1 %v920_v22  ;;  %v1012_v22 = vmov 0.0  }
  0x20   : > { %842 = vmatpush3.bf16.msra.mxu0 %v909_v12  ;;  %865 = vmatprep.subr.bf16.mxu1 %v921_v23  ;;  %247 = vst [vmem:[%s1123_s17] sm:$0x1] %v1012_v22 }
  0x21   : > { %843 = vmatprep.subr.bf16.mxu0 %v910_v13 }
  0x23   : > { %866 = vmatpush3.bf16.msra.mxu1 %v921_v23  ;;  %v786_v23 = vld [vmem:[%s1146_s4] ss:$0 sm:$0xff] }
  0x24   : > { %844 = vmatpush3.bf16.msra.mxu0 %v910_v13  ;;  %867 = vmatprep.subr.bf16.mxu1 %v922_v24 }
  0x27   : > { %846 = vmatmul.mubr.bf16.vlgmr.msra.gmra.mrb[0].mxu0 %v290_v14  ;;  %868 = vmatpush3.bf16.msra.mxu1 %v922_v24 }
  0x28   : > { %849 = vmatprep.mubr.bf16.mxu0 %v291_v15 }
  0x2f   : > { %850 = vmatmul.mubr.bf16.gmra.mrb[4].mxu0 %v292_v16 }
  0xfa   : > { %v847_v26 = vpop.f32.mrb[0].mxu0 }
  0xfb   : > { %v407_v27 = vadd.f32 %v847_v26, %v769_v25  ;;  %v398_v28 = vpop.f32.mrb[1].mxu0 }
  0xfc   : > { %v399_v29 = vadd.f32 %v769_v25, %v398_v28  ;;  %v848_v30 = vpop.f32.mrb[2].mxu0 }
  0xfd   : > { %v780_v31 = vmul.f32 -1.442695, %v407_v27  ;;  %v410_v32 = vadd.f32 %v848_v30, %v769_v25  ;;  %v401_v33 = vpop.f32.mrb[3].mxu0 }
  0xfe   : > { %v778_v34 = vmul.f32 -1.442695, %v399_v29  ;;  %v402_v35 = vadd.f32 %v769_v25, %v401_v33 }
  0xff   : > { %923 = vpow2.f32 %v780_v31  ;;  %v781_v36 = vmul.f32 -1.442695, %v410_v32 }
 0x100   : > { %925 = vpow2.f32 %v778_v34  ;;  %v779_v37 = vmul.f32 -1.442695, %v402_v35 }
 0x101   : > { %927 = vpow2.f32 %v781_v36 }
 0x102   : > { %929 = vpow2.f32 %v779_v37  ;;  %v851_v38 = vpop.f32.mrb[4].mxu0 }
 0x103   : > { %v423_v39 = vadd.f32 %v851_v38, %v769_v25  ;;  %v414_v40 = vpop.f32.mrb[5].mxu0 }
 0x104   : > { %v415_v41 = vadd.f32 %v769_v25, %v414_v40  ;;  %v852_v42 = vpop.f32.mrb[6].mxu0 }
 0x105   : > { %v784_v43 = vmul.f32 -1.442695, %v423_v39  ;;  %v426_v44 = vadd.f32 %v852_v42, %v769_v25  ;;  %v417_v45 = vpop.f32.mrb[7].mxu0 }
 0x106   : > { %v782_v46 = vmul.f32 -1.442695, %v415_v41  ;;  %v418_v47 = vadd.f32 %v769_v25, %v417_v45 }
 0x107   : > { %931 = vpow2.f32 %v784_v43  ;;  %v785_v48 = vmul.f32 -1.442695, %v426_v44 }
 0x108   : > { %933 = vpow2.f32 %v782_v46  ;;  %v783_v49 = vmul.f32 -1.442695, %v418_v47 }
 0x109   : > { %v924_v50 = vpop.eup %923  ;;  %935 = vpow2.f32 %v785_v48 }
 0x10a   : > { %v926_v51 = vpop.eup %925  ;;  %v455_v52 = vadd.f32 1.0, %v924_v50  ;;  %937 = vpow2.f32 %v783_v49 }
 0x10b   : > { %v928_v53 = vpop.eup %927  ;;  %v453_v54 = vadd.f32 1.0, %v926_v51 }
 0x10c   : > { %v930_v55 = vpop.eup %929  ;;  %939 = vrcp.f32 %v455_v52  ;;  %v456_v56 = vadd.f32 1.0, %v928_v53 }
 0x10d   : > { %941 = vrcp.f32 %v453_v54  ;;  %v454_v57 = vadd.f32 1.0, %v930_v55 }
 0x10e   : > { %943 = vrcp.f32 %v456_v56 }
 0x10f   : > { %945 = vrcp.f32 %v454_v57 }
 0x111   : > { %v932_v58 = vpop.eup %931 }
 0x112   : > { %v934_v59 = vpop.eup %933  ;;  %v459_v60 = vadd.f32 1.0, %v932_v58 }
 0x113   : > { %v936_v61 = vpop.eup %935  ;;  %v457_v62 = vadd.f32 1.0, %v934_v59 }
 0x114   : > { %v938_v63 = vpop.eup %937  ;;  %947 = vrcp.f32 %v459_v60  ;;  %v460_v0 = vadd.f32 1.0, %v936_v61 }
 0x115   : > { %949 = vrcp.f32 %v457_v62  ;;  %v458_v1 = vadd.f32 1.0, %v938_v63 }
 0x116   : > { %v940_v2 = vpop.eup %939  ;;  %951 = vrcp.f32 %v460_v0 }
 0x117   : > { %v942_v3 = vpop.eup %941  ;;  %953 = vrcp.f32 %v458_v1  ;;  %v479_v6 = vmul.f32 %v940_v2, %v407_v27 }
 0x118   : > { %v944_v4 = vpop.eup %943  ;;  %v477_v8 = vmul.f32 %v942_v3, %v399_v29 }
 0x119   : > { %v946_v5 = vpop.eup %945  ;;  %v480_v7 = vmul.f32 %v944_v4, %v410_v32 }
 0x11a   : > { %v478_v9 = vmul.f32 %v946_v5, %v402_v35 }
 0x11b   : > { %v486_v10 = vpack.c.bf16 %v480_v7, %v479_v6 }
 0x11c   : > { %v485_v11 = vpack.c.bf16 %v478_v9, %v477_v8 }
 0x11e   : > { %v948_v12 = vpop.eup %947  ;;  %869 = vmatprep.mubr.bf16.mxu1 %v485_v11 }
 0x11f   : > { %v950_v13 = vpop.eup %949  ;;  %870 = vmatmul.mubr.bf16.vlgmr.msra.gmra.mrb[0].mxu1 %v486_v10  ;;  %v483_v16 = vmul.f32 %v948_v12, %v423_v39 }
 0x120   : > { %v952_v14 = vpop.eup %951  ;;  %v481_v18 = vmul.f32 %v950_v13, %v415_v41 }
 0x121   : > { %v954_v15 = vpop.eup %953  ;;  %v484_v17 = vmul.f32 %v952_v14, %v426_v44 }
 0x122   : > { %v482_v19 = vmul.f32 %v954_v15, %v418_v47 }
 0x123   : > { %v488_v20 = vpack.c.bf16 %v484_v17, %v483_v16 }
 0x124   : > { %v487_v21 = vpack.c.bf16 %v482_v19, %v481_v18 }
 0x126   : > { %873 = vmatprep.mubr.bf16.mxu1 %v487_v21 }
 0x127   : > { %874 = vmatmul.mubr.bf16.gmra.mrb[4].mxu1 %v488_v20 }
 0x1f2   : > { %v871_v24 = vpop.f32.mrb[0].mxu1 }
 0x1f3   : > { %v603_v25 = vadd.f32 %v871_v24, %v786_v23  ;;  %v594_v26 = vpop.f32.mrb[1].mxu1 }
 0x1f4   : > { %v595_v27 = vadd.f32 %v786_v23, %v594_v26  ;;  %v872_v28 = vpop.f32.mrb[2].mxu1 }
 0x1f5   : > { %v797_v29 = vmul.f32 -1.442695, %v603_v25  ;;  %v606_v30 = vadd.f32 %v872_v28, %v786_v23  ;;  %v597_v31 = vpop.f32.mrb[3].mxu1  ;;  %v681_v28 = vld [vmem:[%s1123_s17] sm:$0x1] }
 0x1f6   : > { %v795_v32 = vmul.f32 -1.442695, %v595_v27  ;;  %v598_v33 = vadd.f32 %v786_v23, %v597_v31 }
 0x1f7   : > { %955 = vpow2.f32 %v797_v29  ;;  %v798_v34 = vmul.f32 -1.442695, %v606_v30 }
 0x1f8   : > { %957 = vpow2.f32 %v795_v32  ;;  %v796_v35 = vmul.f32 -1.442695, %v598_v33 }
 0x1f9   : > { %959 = vpow2.f32 %v798_v34 }
 0x1fa   : > { %961 = vpow2.f32 %v796_v35  ;;  %v875_v36 = vpop.f32.mrb[4].mxu1 }
 0x1fb   : > { %v619_v37 = vadd.f32 %v875_v36, %v786_v23  ;;  %v610_v38 = vpop.f32.mrb[5].mxu1 }
 0x1fc   : > { %v611_v39 = vadd.f32 %v786_v23, %v610_v38  ;;  %v876_v40 = vpop.f32.mrb[6].mxu1 }
 0x1fd   : > { %v801_v41 = vmul.f32 -1.442695, %v619_v37  ;;  %v622_v42 = vadd.f32 %v876_v40, %v786_v23  ;;  %v613_v43 = vpop.f32.mrb[7].mxu1 }
 0x1fe   : > { %v799_v44 = vmul.f32 -1.442695, %v611_v39  ;;  %v614_v45 = vadd.f32 %v786_v23, %v613_v43 }
 0x1ff   : > { %963 = vpow2.f32 %v801_v41  ;;  %v802_v46 = vmul.f32 -1.442695, %v622_v42 }
 0x200   : > { %965 = vpow2.f32 %v799_v44  ;;  %v800_v47 = vmul.f32 -1.442695, %v614_v45 }
 0x201   : > { %v956_v48 = vpop.eup %955  ;;  %967 = vpow2.f32 %v802_v46 }
 0x202   : > { %v958_v49 = vpop.eup %957  ;;  %v651_v50 = vadd.f32 1.0, %v956_v48  ;;  %969 = vpow2.f32 %v800_v47 }
 0x203   : > { %v960_v51 = vpop.eup %959  ;;  %v649_v52 = vadd.f32 1.0, %v958_v49 }
 0x204   : > { %v962_v53 = vpop.eup %961  ;;  %v652_v54 = vadd.f32 1.0, %v960_v51 }
 0x205   : > { %971 = vrcp.f32 %v649_v52  ;;  %v650_v55 = vadd.f32 1.0, %v962_v53 }
 0x206   : > { %973 = vrcp.f32 %v651_v50 }
 0x207   : > { %975 = vrcp.f32 %v650_v55 }
 0x208   : > { %977 = vrcp.f32 %v652_v54 }
 0x209   : > { %v964_v56 = vpop.eup %963 }
 0x20a   : > { %v966_v57 = vpop.eup %965  ;;  %v655_v58 = vadd.f32 1.0, %v964_v56 }
 0x20b   : > { %v968_v59 = vpop.eup %967  ;;  %v653_v60 = vadd.f32 1.0, %v966_v57 }
 0x20c   : > { %v970_v61 = vpop.eup %969  ;;  %v656_v62 = vadd.f32 1.0, %v968_v59 }
 0x20d   : > { %979 = vrcp.f32 %v653_v60  ;;  %v654_v63 = vadd.f32 1.0, %v970_v61 }
 0x20e   : > { %981 = vrcp.f32 %v655_v58 }
 0x20f   : > { %v972_v0 = vpop.eup %971  ;;  %983 = vrcp.f32 %v654_v63 }
 0x210   : > { %v974_v1 = vpop.eup %973  ;;  %985 = vrcp.f32 %v656_v62  ;;  %v673_v3 = vmul.f32 %v972_v0, %v595_v27 }
 0x211   : > { %v976_v2 = vpop.eup %975  ;;  %v675_v6 = vmul.f32 %v974_v1, %v603_v25 }
 0x212   : > { %v674_v4 = vmul.f32 %v976_v2, %v598_v33  ;;  %v978_v5 = vpop.eup %977 }
 0x213   : > { %v676_v8 = vmul.f32 %v978_v5, %v606_v30 }
 0x214   : > { %v682_v7 = vadd.f32 %v674_v4, %v673_v3 }
 0x216   : > { %v683_v9 = vadd.f32 %v682_v7, %v675_v6 }
 0x217   : > { %v980_v10 = vpop.eup %979 }
 0x218   : > { %v982_v11 = vpop.eup %981  ;;  %v677_v12 = vmul.f32 %v980_v10, %v611_v39  ;;  %v684_v13 = vadd.f32 %v683_v9, %v676_v8 }
 0x219   : > { %v984_v14 = vpop.eup %983  ;;  %v679_v18 = vmul.f32 %v982_v11, %v619_v37 }
 0x21a   : > { %v685_v15 = vadd.f32 %v684_v13, %v677_v12  ;;  %v678_v16 = vmul.f32 %v984_v14, %v614_v45  ;;  %v986_v17 = vpop.eup %985 }
 0x21b   : > { %v680_v20 = vmul.f32 %v986_v17, %v622_v42 }
 0x21c   : > { %v686_v19 = vadd.f32 %v685_v15, %v678_v16 }
 0x21e   : > { %v687_v21 = vadd.f32 %v686_v19, %v679_v18 }
 0x220   : > { %v688_v22 = vadd.f32 %v687_v21, %v680_v20 }
 0x222   : > { %v689_v23 = vrot.slane %v688_v22, 4 }
 0x224   : > { %v690_v24 = vadd.f32 %v689_v23, %v688_v22 }
 0x226   : > { %v691_v25 = vrot.slane %v690_v24, 2 }
 0x228   : > { %v692_v26 = vadd.f32 %v691_v25, %v690_v24 }
 0x22a   : > { %v693_v27 = vrot.slane %v692_v26, 1 }
 0x22c   : > { %v694_v29 = vadd.f32 %v693_v27, %v692_v26 }
 0x22e   : > { %v695_v30 = vadd.f32 %v694_v29, %v681_v28 }
 0x230   : > { %696 = vst [vmem:[%s1123_s17] sm:$0x1] %v695_v30 }
 0x237   : > { %v700_v31 = vld [vmem:[%s1123_s17] sm:$0x1] }
 0x238   : > { %v701_v32 = vmul.f32 0.015625, %v700_v31 }
 0x23a   : > { %702 = vst [vmem:[%s1123_s17] sm:$0x1] %v701_v32 }
 0x23b PF: > { %s15_s20 = sadd.s32 1, %s1009_s20   ;;  %s1148_s18 = smov %s1005_s19 }
 0x23c   : > { %p12_p6 = scmp.ge.s32.totalorder %s15_s20, 4   ;;  %s1149_s19 = smov %s1151_s21 }
 0x23e   :  { %14 = sbr.rel (!%p12_p6) target bundleno = 2 (0x2), region = 78 }

</bundles_post_ra>
